<compile_context>
chip_gen: v7x
topology: tpu7x:2x2x1
jax: 0.10.0
libtpu: 0.0.40
codegen_flags: <defaults>
</compile_context>

<pallas_src>
import functools

import numpy as np
import jax
import jax.numpy as jnp
from jax.experimental import pallas as pl
from jax.experimental.pallas import tpu as pltpu


# MXU input dtype (storage of xproj, y, and weights). Gate math, h/c state and
# the final projection output stay float32. Set to jnp.float32 to disable.
MXU_DTYPE = jnp.bfloat16


def _round_up(x, m):
    return (x + m - 1) // m * m


def _cdiv(a, b):
    return -(-a // b)


# ----------------------------------------------------------------------------
# Per-generation resource settings (v5e/v6e: 128 MiB VMEM, v7x: 64 MiB)
# ----------------------------------------------------------------------------
def _detect_vmem_capacity_bytes():
    try:
        info = pltpu.get_tpu_info()
        cap = getattr(info, "vmem_capacity_bytes", None)
        if cap:
            return int(cap)
    except Exception:
        pass
    return 64 * 1024 * 1024        # conservative fallback (v7x-sized)


_VMEM_CAPACITY = _detect_vmem_capacity_bytes()
VMEM_LIMIT_BYTES = int(_VMEM_CAPACITY * 0.8)          # leave compiler headroom
DEFAULT_TT_BLOCK = 16 if _VMEM_CAPACITY <= 64 * 1024 * 1024 else 32


def _const_spec(block_shape, index_map):
    """BlockSpec for a constant-index (resident) block: single-buffered."""
    try:
        return pl.BlockSpec(block_shape, index_map, pipeline_mode=pl.Buffered(1))
    except Exception:
        return pl.BlockSpec(block_shape, index_map)


def _pick_tiles(M, tm_max=512):
    """Row tile size: >=2 tiles when possible (megacore), minimal padding."""
    n_tiles = max(2, _cdiv(M, tm_max))
    tm = _round_up(_cdiv(M, n_tiles), 8)
    Mp = _round_up(M, tm)
    return tm, Mp


# ----------------------------------------------------------------------------
# Tiled linear kernels (input projection / final projection)
# ----------------------------------------------------------------------------
def _linear1_kernel(x_ref, w_ref, b_ref, o_ref):
    acc = jnp.dot(x_ref[...].astype(w_ref.dtype), w_ref[...],
                  preferred_element_type=jnp.float32)
    o_ref[...] = (acc + b_ref[...]).astype(o_ref.dtype)


def _linear2_kernel(x1_ref, x2_ref, w1_ref, w2_ref, b_ref, o_ref):
    # o = x1 @ w1 + x2 @ w2 + b   (avoids materializing concat([x1, x2], -1))
    acc = jnp.dot(x1_ref[...].astype(w1_ref.dtype), w1_ref[...],
                  preferred_element_type=jnp.float32)
    acc = acc + jnp.dot(x2_ref[...].astype(w2_ref.dtype), w2_ref[...],
                        preferred_element_type=jnp.float32)
    o_ref[...] = (acc + b_ref[...]).astype(o_ref.dtype)


def linear_pallas(x, w_t, b, *, out_dtype=jnp.float32, tm_max=512):
    """x: (M, K), w_t: (K, N), b: (N,) f32 -> (M, N) out_dtype."""
    M, K = x.shape
    N = w_t.shape[1]
    tm, Mp = _pick_tiles(M, tm_max)
    if Mp != M:
        x = jnp.pad(x, ((0, Mp - M), (0, 0)))
    flops = 2 * Mp * K * N
    bytes_accessed = (Mp * K * x.dtype.itemsize + K * N * w_t.dtype.itemsize
                      + N * 4 + Mp * N * jnp.dtype(out_dtype).itemsize)
    out = pl.pallas_call(
        _linear1_kernel,
        out_shape=jax.ShapeDtypeStruct((Mp, N), out_dtype),
        grid=(Mp // tm,),
        in_specs=[
            pl.BlockSpec((tm, K), lambda i: (i, 0)),
            _const_spec((K, N), lambda i: (0, 0)),     # weight resident, 1 buffer
            _const_spec((1, N), lambda i: (0, 0)),
        ],
        out_specs=pl.BlockSpec((tm, N), lambda i: (i, 0)),
        compiler_params=pltpu.CompilerParams(
            dimension_semantics=("parallel",),
            vmem_limit_bytes=VMEM_LIMIT_BYTES),
        cost_estimate=pl.CostEstimate(flops=int(flops), transcendentals=0,
                                      bytes_accessed=int(bytes_accessed)),
    )(x, w_t, b.reshape(1, N))
    return out if Mp == M else out[:M]


def linear2_pallas(x1, x2, w1_t, w2_t, b, *, out_dtype=jnp.float32, tm_max=512):
    """x1,x2: (M, K); w1_t,w2_t: (K, N); b: (N,) -> x1@w1 + x2@w2 + b."""
    M, K = x1.shape
    N = w1_t.shape[1]
    tm, Mp = _pick_tiles(M, tm_max)
    if Mp != M:
        x1 = jnp.pad(x1, ((0, Mp - M), (0, 0)))
        x2 = jnp.pad(x2, ((0, Mp - M), (0, 0)))
    flops = 4 * Mp * K * N
    bytes_accessed = (2 * Mp * K * x1.dtype.itemsize + 2 * K * N * w1_t.dtype.itemsize
                      + N * 4 + Mp * N * jnp.dtype(out_dtype).itemsize)
    out = pl.pallas_call(
        _linear2_kernel,
        out_shape=jax.ShapeDtypeStruct((Mp, N), out_dtype),
        grid=(Mp // tm,),
        in_specs=[
            pl.BlockSpec((tm, K), lambda i: (i, 0)),
            pl.BlockSpec((tm, K), lambda i: (i, 0)),
            _const_spec((K, N), lambda i: (0, 0)),
            _const_spec((K, N), lambda i: (0, 0)),
            _const_spec((1, N), lambda i: (0, 0)),
        ],
        out_specs=pl.BlockSpec((tm, N), lambda i: (i, 0)),
        compiler_params=pltpu.CompilerParams(
            dimension_semantics=("parallel",),
            vmem_limit_bytes=VMEM_LIMIT_BYTES),
        cost_estimate=pl.CostEstimate(flops=int(flops), transcendentals=0,
                                      bytes_accessed=int(bytes_accessed)),
    )(x1, x2, w1_t, w2_t, b.reshape(1, N))
    return out if Mp == M else out[:M]


# ----------------------------------------------------------------------------
# Fused bidirectional LSTM recurrence (TT timesteps per grid step, time-major)
# ----------------------------------------------------------------------------
def _bilstm_block_kernel(mf_ref, mb_ref, xpf_ref, xpb_ref, whh_ref,
                         yf_ref, yb_ref, hf_ref, cf_ref, hb_ref, cb_ref,
                         *, tt_block, hidden):
    """One grid step = tt_block timesteps of BOTH directions (time-major blocks).

    Forward reads its xproj/mask/output block in natural time order; the
    backward direction's blocks are selected with a reversed block index map
    and traversed in reverse inside the block, so kernel time always advances
    while the backward direction walks original time backwards.
    h/c outputs are grid-resident (constant out index) and act as the
    recurrent state; they are zero-initialized at t == 0 (prev_state=None).
    """
    @pl.when(pl.program_id(0) == 0)
    def _init():
        hf_ref[...] = jnp.zeros_like(hf_ref)
        cf_ref[...] = jnp.zeros_like(cf_ref)
        hb_ref[...] = jnp.zeros_like(hb_ref)
        cb_ref[...] = jnp.zeros_like(cb_ref)

    h_f = hf_ref[...]
    c_f = cf_ref[...]
    h_b = hb_ref[...]
    c_b = cb_ref[...]
    w_f = whh_ref[0]     # (Hp, 4Hp)
    w_b = whh_ref[1]
    H = hidden
    B = h_f.shape[0]

    def sigmoid(x):
        # single EUP op per gate (tanh) instead of exp + reciprocal
        return 0.5 * (jnp.tanh(0.5 * x) + 1.0)

    def cell(xp_row, h_prev, c_prev, w):
        gates = xp_row.astype(jnp.float32) + jnp.dot(
            h_prev.astype(w.dtype), w, preferred_element_type=jnp.float32)
        # Gate slabs are Hp-wide (Hp % 128 == 0) -> lane-aligned slices.
        i = sigmoid(gates[:, 0 * H:1 * H])
        f = sigmoid(gates[:, 1 * H:2 * H])
        g = jnp.tanh(gates[:, 2 * H:3 * H])
        o = sigmoid(gates[:, 3 * H:4 * H])
        c_new = f * c_prev + i * g
        h_new = o * jnp.tanh(c_new)
        return h_new, c_new

    # Static unroll: tt is a compile-time constant, so every slice/store is
    # static; the live carried state is only the four (B, Hp) h/c tensors.
    for tt in range(tt_block):
        # ---- forward direction, local time tt ----
        hn, cn = cell(xpf_ref[tt], h_f, c_f, w_f)
        m_f = jnp.broadcast_to(mf_ref[tt] > 0.0, (B, H))   # one broadcast/step
        h_f = jnp.where(m_f, hn, h_f)                      # frozen on padded steps
        c_f = jnp.where(m_f, cn, c_f)
        yf_ref[tt] = jnp.where(m_f, hn, 0.0).astype(yf_ref.dtype)

        # ---- backward direction, local reversed time ----
        rt = tt_block - 1 - tt
        hn, cn = cell(xpb_ref[rt], h_b, c_b, w_b)
        m_b = jnp.broadcast_to(mb_ref[rt] > 0.0, (B, H))
        h_b = jnp.where(m_b, hn, h_b)
        c_b = jnp.where(m_b, cn, c_b)
        yb_ref[rt] = jnp.where(m_b, hn, 0.0).astype(yb_ref.dtype)

    hf_ref[...] = h_f
    cf_ref[...] = c_f
    hb_ref[...] = h_b
    cb_ref[...] = c_b


def bilstm_layer(xp_f, xp_b, mask_tb1, whh, *, tt_block):
    """One bidirectional LSTM layer (time-major).

    xp_f/xp_b: (T_pad, B, 4Hp) precomputed x@W_ih^T + b_ih + b_hh per direction.
    mask_tb1 : (T_pad, B, 1) float activity mask (1.0 where t < length).
    whh      : (2, Hp, 4Hp) = stacked, gate-padded W_hh^T for [fwd, bwd].
    Returns y_f, y_b (T_pad, B, Hp) bf16 in natural time order, plus final h/c.
    """
    T_pad, B, G = xp_f.shape
    Hp = G // 4
    assert T_pad % tt_block == 0
    nT = T_pad // tt_block

    kernel = functools.partial(_bilstm_block_kernel, tt_block=tt_block, hidden=Hp)

    y_isize = jnp.dtype(MXU_DTYPE).itemsize
    flops = 2 * (2 * T_pad * B * Hp * G) + 12 * 2 * T_pad * B * Hp
    trans = 5 * 2 * T_pad * B * Hp
    bytes_accessed = (2 * T_pad * B * G * xp_f.dtype.itemsize
                      + 2 * T_pad * B * Hp * y_isize
                      + 2 * Hp * G * whh.dtype.itemsize
                      + 2 * T_pad * B * 4)

    out_shape = (
        jax.ShapeDtypeStruct((T_pad, B, Hp), MXU_DTYPE),    # y_f (time-major, bf16)
        jax.ShapeDtypeStruct((T_pad, B, Hp), MXU_DTYPE),    # y_b (natural time)
        jax.ShapeDtypeStruct((B, Hp), jnp.float32),         # h_f
        jax.ShapeDtypeStruct((B, Hp), jnp.float32),         # c_f
        jax.ShapeDtypeStruct((B, Hp), jnp.float32),         # h_b
        jax.ShapeDtypeStruct((B, Hp), jnp.float32),         # c_b
    )
    # TODO(synk): on v7x, split the two directions over a leading "parallel"
    # grid axis of size 2 (per-direction index maps) to use both TensorCores.
    return pl.pallas_call(
        kernel,
        out_shape=out_shape,
        grid=(nT,),
        in_specs=[
            pl.BlockSpec((tt_block, B, 1), lambda t: (t, 0, 0)),            # mask (fwd)
            pl.BlockSpec((tt_block, B, 1), lambda t: (nT - 1 - t, 0, 0)),   # mask (bwd)
            pl.BlockSpec((tt_block, B, G), lambda t: (t, 0, 0)),            # xproj fwd
            pl.BlockSpec((tt_block, B, G), lambda t: (nT - 1 - t, 0, 0)),   # xproj bwd
            _const_spec((2, Hp, G), lambda t: (0, 0, 0)),                   # W_hh^T resident
        ],
        out_specs=(
            pl.BlockSpec((tt_block, B, Hp), lambda t: (t, 0, 0)),
            pl.BlockSpec((tt_block, B, Hp), lambda t: (nT - 1 - t, 0, 0)),
            pl.BlockSpec((B, Hp), lambda t: (0, 0)),   # grid-resident state
            pl.BlockSpec((B, Hp), lambda t: (0, 0)),
            pl.BlockSpec((B, Hp), lambda t: (0, 0)),
            pl.BlockSpec((B, Hp), lambda t: (0, 0)),
        ),
        compiler_params=pltpu.CompilerParams(
            dimension_semantics=("arbitrary",),        # time recurrence is serial
            vmem_limit_bytes=VMEM_LIMIT_BYTES),
        cost_estimate=pl.CostEstimate(flops=int(flops), transcendentals=int(trans),
                                      bytes_accessed=int(bytes_accessed)),
    )(mask_tb1, mask_tb1, xp_f, xp_b, whh)


# ----------------------------------------------------------------------------
# Weight preparation: 128-lane-aligned gate slabs (zero-padded hidden dim)
# ----------------------------------------------------------------------------
def _pad_gate_cols(w_t, H, Hp):
    """(K, 4H) -> (K, 4Hp): each gate slab zero-padded to Hp lanes."""
    if Hp == H:
        return w_t
    K = w_t.shape[0]
    return jnp.pad(w_t.reshape(K, 4, H), ((0, 0), (0, 0), (0, Hp - H))).reshape(K, 4 * Hp)


def _pad_gate_bias(b, H, Hp):
    if Hp == H:
        return b
    return jnp.pad(b.reshape(4, H), ((0, 0), (0, Hp - H))).reshape(4 * Hp)


def _pad_rows(w, H, Hp):
    if Hp == H:
        return w
    return jnp.pad(w, ((0, Hp - H), (0, 0)))


# ----------------------------------------------------------------------------
# RNN module forward (typ='blstm', eval mode, prev_state=None)
# ----------------------------------------------------------------------------
def rnn_forward(xs_pad, ilens, params, *, elayers, cdim, tt_block=None):
    """Equivalent of RNN.forward.

    Returns (ys (B, Tout, hdim), ilens, (h_n, c_n)) with h_n, c_n of shape
    (elayers * 2, B, cdim), PyTorch layer/direction ordering.
    """
    if tt_block is None:
        tt_block = DEFAULT_TT_BLOCK
    B, T, idim = xs_pad.shape
    H = cdim
    Hp = _round_up(H, 128)      # lane-aligned on-chip hidden size (pad lanes stay 0)
    G = 4 * Hp

    # NOTE: host sync on ilens (eval-script usage, same as torch .cpu() call).
    ilens_np = np.asarray(ilens)
    assert np.all(ilens_np[:-1] >= ilens_np[1:]), "lengths must be sorted descending"
    t_out = int(ilens_np.max())          # pad_packed_sequence truncates to max length

    T_pad = _round_up(T, tt_block)
    ilens_j = jnp.asarray(ilens, dtype=jnp.int32)

    # (T_pad, B, 1) float activity mask: 1.0 where t < length (packed semantics).
    mask = (jnp.arange(T_pad, dtype=jnp.int32)[:, None] < ilens_j[None, :])
    mask_tb1 = mask.astype(jnp.float32)[:, :, None]

    # Time-major once at entry; transpose back once at exit.
    x_tm = jnp.transpose(xs_pad, (1, 0, 2))               # (T, B, idim)
    if T_pad != T:
        x_tm = jnp.pad(x_tm, ((0, T_pad - T), (0, 0), (0, 0)))
    x_flat = x_tm.reshape(T_pad * B, idim)

    yf_flat = yb_flat = None
    h_list, c_list = [], []
    for l in range(elayers):
        xps = []
        for d in range(2):                         # 0 = forward, 1 = backward
            p = params["lstm"][l][d]
            bias = _pad_gate_bias(p["b_ih"] + p["b_hh"], H, Hp)
            if l == 0:
                w_ih_t = _pad_gate_cols(p["w_ih"].T, H, Hp).astype(MXU_DTYPE)
                xp = linear_pallas(x_flat, w_ih_t, bias, out_dtype=MXU_DTYPE)
            else:
                # previous layer kept as two (T_pad*B, Hp) halves -> dual matmul,
                # no concatenated (.., 2H) tensor ever materialized.
                w_ih_t = p["w_ih"].T                       # (2H, 4H)
                w1 = _pad_rows(_pad_gate_cols(w_ih_t[:H], H, Hp), H, Hp)
                w2 = _pad_rows(_pad_gate_cols(w_ih_t[H:], H, Hp), H, Hp)
                xp = linear2_pallas(yf_flat, yb_flat,
                                    w1.astype(MXU_DTYPE), w2.astype(MXU_DTYPE),
                                    bias, out_dtype=MXU_DTYPE)
            xps.append(xp.reshape(T_pad, B, G))
        whh = jnp.stack(
            [_pad_rows(_pad_gate_cols(params["lstm"][l][d]["w_hh"].T, H, Hp), H, Hp)
             for d in range(2)], axis=0).astype(MXU_DTYPE)          # (2, Hp, 4Hp)
        y_f, y_b, h_f, c_f, h_b, c_b = bilstm_layer(
            xps[0], xps[1], mask_tb1, whh, tt_block=tt_block)
        h_list += [h_f[:, :H], h_b[:, :H]]
        c_list += [c_f[:, :H], c_b[:, :H]]
        yf_flat = y_f.reshape(T_pad * B, Hp)
        yb_flat = y_b.reshape(T_pad * B, Hp)
        # inter-layer dropout is a no-op in eval mode.

    # Final Linear on the zero-padded features (padded rows -> bias), then
    # truncate to max length like pad_packed_sequence.
    w_last_t = params["w_last"].T                     # (2*cdim, hdim)
    hdim = params["w_last"].shape[0]
    w1 = _pad_rows(w_last_t[:H], H, Hp)
    w2 = _pad_rows(w_last_t[H:], H, Hp)
    ys = linear2_pallas(yf_flat, yb_flat,
                        w1.astype(MXU_DTYPE), w2.astype(MXU_DTYPE),
                        params["b_last"], out_dtype=jnp.float32)
    ys = ys.reshape(T_pad, B, hdim)
    ys = jnp.transpose(ys, (1, 0, 2))[:, :t_out]      # back to batch-first once

    h_n = jnp.stack(h_list, axis=0)   # (elayers*2, B, cdim), PyTorch ordering
    c_n = jnp.stack(c_list, axis=0)
    return ys, ilens_j, (h_n, c_n)


# ----------------------------------------------------------------------------
# Deterministic parameter init (mirrors nn.LSTM / nn.Linear shapes)
# ----------------------------------------------------------------------------
def init_params(key, idim, elayers, cdim, hdim):
    params = {"lstm": []}
    k = key
    s_rnn = 1.0 / np.sqrt(cdim)
    for l in range(elayers):
        in_dim = idim if l == 0 else 2 * cdim     # bidirectional: next layer sees 2*cdim
        dirs = []
        for _d in range(2):
            k, k1, k2, k3, k4 = jax.random.split(k, 5)
            dirs.append(dict(
                w_ih=jax.random.uniform(k1, (4 * cdim, in_dim), jnp.float32, -s_rnn, s_rnn),
                w_hh=jax.random.uniform(k2, (4 * cdim, cdim), jnp.float32, -s_rnn, s_rnn),
                b_ih=jax.random.uniform(k3, (4 * cdim,), jnp.float32, -s_rnn, s_rnn),
                b_hh=jax.random.uniform(k4, (4 * cdim,), jnp.float32, -s_rnn, s_rnn),
            ))
        params["lstm"].append(dirs)
    k, k1, k2 = jax.random.split(k, 3)
    s_lin = 1.0 / np.sqrt(2 * cdim)
    params["w_last"] = jax.random.uniform(k1, (hdim, 2 * cdim), jnp.float32, -s_lin, s_lin)
    params["b_last"] = jax.random.uniform(k2, (hdim,), jnp.float32, -s_lin, s_lin)
    return params


if __name__ == "__main__":
    B, T, idim, cdim, hdim, elayers = 2, 8, 16, 32, 32, 2

    key = jax.random.PRNGKey(0)
    kx, kp = jax.random.split(key)
    xs_pad = jax.random.normal(kx, (B, T, idim), dtype=jnp.float32)
    ilens = jnp.array([8, 5], dtype=jnp.int32)   # sorted descending (pack_padded_sequence)

    params = init_params(kp, idim, elayers, cdim, hdim)

    ys, olens, (h_n, c_n) = rnn_forward(
        xs_pad, ilens, params, elayers=elayers, cdim=cdim
    )
    jax.block_until_ready((ys, olens, h_n, c_n))

    assert ys.shape == (B, int(np.asarray(ilens).max()), hdim)
    assert h_n.shape == (elayers * 2, B, cdim)
    assert c_n.shape == (elayers * 2, B, cdim)
    assert bool(jnp.all(jnp.isfinite(ys)))
    print("KERNEL_OK")
</pallas_src>

<mosaic_0001>
module attributes {stable_mosaic.version = 11 : i64} {
  func.func @_linear1_kernel(%arg0: i32, %arg1: memref<16x16xf32, #tpu.memory_space<vmem>>, %arg2: memref<16x512xbf16, #tpu.memory_space<vmem>>, %arg3: memref<1x512xf32, #tpu.memory_space<vmem>>, %arg4: memref<16x512xbf16, #tpu.memory_space<vmem>>) attributes {dimension_semantics = [#tpu.dimension_semantics<parallel>], iteration_bounds = array<i64: 2>, scalar_prefetch = 0 : i64, scratch_operands = 0 : i64, tpu.core_type = #tpu.core_type<tc>, window_params = [{transform_indices = @transform_0, window_bounds = array<i64: 16, 16>}, {pipeline_mode = #tpu.pipeline_mode<synchronous>, transform_indices = @transform_1, window_bounds = array<i64: 16, 512>}, {pipeline_mode = #tpu.pipeline_mode<synchronous>, transform_indices = @transform_2, window_bounds = array<i64: 1, 512>}, {transform_indices = @transform_3, window_bounds = array<i64: 16, 512>}]} {
    %c0 = arith.constant 0 : index
    %c0_0 = arith.constant 0 : index
    %0 = vector.load %arg1[%c0, %c0_0] : memref<16x16xf32, #tpu.memory_space<vmem>>, vector<16x16xf32>
    %1 = arith.truncf %0 : vector<16x16xf32> to vector<16x16xbf16>
    %c0_1 = arith.constant 0 : index
    %c0_2 = arith.constant 0 : index
    %2 = vector.load %arg2[%c0_1, %c0_2] : memref<16x512xbf16, #tpu.memory_space<vmem>>, vector<16x512xbf16>
    %cst = arith.constant dense<0.000000e+00> : vector<16x512xf32>
    %3 = tpu.matmul %1, %2, %cst {dimension_numbers = #tpu.dot_dimension_numbers<[1], [0], [0], [1], [0, 0, 1, 1], [], []>} : vector<16x16xbf16>, vector<16x512xbf16>, vector<16x512xf32> -> vector<16x512xf32>
    %c0_3 = arith.constant 0 : index
    %c0_4 = arith.constant 0 : index
    %4 = vector.load %arg3[%c0_3, %c0_4] : memref<1x512xf32, #tpu.memory_space<vmem>>, vector<1x512xf32>
    %5 = vector.broadcast %4 : vector<1x512xf32> to vector<16x512xf32>
    %6 = arith.addf %3, %5 : vector<16x512xf32>
    %7 = arith.truncf %6 : vector<16x512xf32> to vector<16x512xbf16>
    %c0_5 = arith.constant 0 : index
    %c0_6 = arith.constant 0 : index
    %8 = vector.load %arg4[%c0_5, %c0_6] : memref<16x512xbf16, #tpu.memory_space<vmem>>, vector<16x512xbf16>
    tpu.vector_store %arg4[%c0_5, %c0_6], %7 {strides = array<i32>} : memref<16x512xbf16, #tpu.memory_space<vmem>>, vector<16x512xbf16>,
    return
  }
  func.func @transform_0(%arg0: i32) -> (i32, i32) {
    %c0_i32 = arith.constant 0 : i32
    %c0_i32_0 = arith.constant 0 : i32
    return %arg0, %c0_i32 : i32, i32
  }
  func.func @transform_1(%arg0: i32) -> (i32, i32) {
    %c0_i32 = arith.constant 0 : i32
    %c0_i32_0 = arith.constant 0 : i32
    %c0_i32_1 = arith.constant 0 : i32
    return %c0_i32, %c0_i32_0 : i32, i32
  }
  func.func @transform_2(%arg0: i32) -> (i32, i32) {
    %c0_i32 = arith.constant 0 : i32
    %c0_i32_0 = arith.constant 0 : i32
    %c0_i32_1 = arith.constant 0 : i32
    return %c0_i32, %c0_i32_0 : i32, i32
  }
  func.func @transform_3(%arg0: i32) -> (i32, i32) {
    %c0_i32 = arith.constant 0 : i32
    %c0_i32_0 = arith.constant 0 : i32
    return %arg0, %c0_i32 : i32, i32
  }
}

</mosaic_0001>

<bundles_post_ra>
// kernel: tpu_custom_call.1
= control target key start
LH: loop header
LB: loop body
LE: loop exit
PB: predicated region body
PF: predicated region fallthrough
CT: control target
= control target key end

     0   :  { %8 = vsyncpa [#allocation3], 0  ;;  %s703_s0 = inlined_call_operand.vmem [shape: f32[32,16], index: 0, kind: input, shape index: {}]   ;;  %s704_s1 = inlined_call_operand.vmem [shape: bf16[16,512], index: 1, kind: input, shape index: {}]   ;;  %s705_s2 = inlined_call_operand.vmem [shape: f32[1,512], index: 2, kind: input, shape index: {}]   ;;  %s706_s3 = inlined_call_operand.hbm [shape: bf16[32,512], index: 3, kind: output, shape index: {}]  }
   0x1   :  { %10 = vsyncpa [#allocation3 + $0x1], 0  ;;  %s582_s12 = smov 0   ;;  %s584_s13 = smov 0  }
   0x2   :  { %s586_s14 = smov 0   ;;  %s588_s15 = smov 0  }
   0x3 LB: > { %s603_s16 = sadd.s32 4294967295, %s556_s15   ;;  %s417_s17 = sadd.s32 4294967294, %s556_s15   ;;  %s556_s15 = sphi %s588_s15, %s712_s15   ;;  %s552_s14 = sphi %s586_s14, %s711_s14   ;;  %s548_s13 = sphi %s584_s13, %s710_s13   ;;  %s544_s12 = sphi %s582_s12, %s709_s12  }
   0x4   : > { %s607_s18 = sadd.s32 1, %s556_s15   ;;  %s91_s19 = sadd.s32 1, %s552_s14 }
   0x5   : > { %s88_s20 = ssub.s32 %s556_s15, %s607_s18  ;;  %p101_p0 = scmp.ne.s32.totalorder %s552_s14, %s548_s13 }
   0x6   : > { %p89_p1 = scmp.eq.s32.totalorder %s88_s20, 0  ;;  %p102_p2 = scmp.eq.s32.totalorder %s603_s16, 1 }
   0x7   : > { %p107_p3 = scmp.ne.s32.totalorder %s548_s13, %s544_s12  ;;  %p108_p4 = scmp.eq.s32.totalorder %s417_s17, 1 }
   0x8   : > { %s618_s21 = scalar_select %p89_p1, %s552_s14, %s91_s19  }
   0x9   : > { %p620_p5 = por %p102_p2, %p101_p0  ;;  %p624_p6 = por %p108_p4, %p107_p3 }
   0xa   : > { %p420_p7 = scmp.ge.s32.totalorder %s556_s15, 1  ;;  %p141_p8 = scmp.lt.s32.totalorder %s556_s15, 3 }
   0xc   : > { %p142_p9 = pnand %p420_p7, %p141_p8 }
   0xd   : > { %v488_v0 = vld [vmem:[%s704_s1 + $0x4] ss:$16 sps:$4 sm:$0xff] (!%p142_p9)   ;;  %s422_s26 = sshll.u32 (!%p142_p9), %s603_s16, 1  ;;  %v490_v1 = vld [vmem:[%s704_s1 + $0xc] ss:$16 sps:$4 sm:$0xff] (!%p142_p9)   ;;  %v558_v2 = vmov (!%p142_p9), 0   ;;  %v182_v8 = vlaneseq (!%p142_p9) }
   0xe   : > { %145 = sbr.rel (%p142_p9) target bundleno = 261 (0x105), region = 32  ;;  %258 = vmatprep.mubr.bf16.mxu0 (!%p142_p9), %v558_v2  ;;  %301 = vmatprep.mubr.bf16.mxu1 (!%p142_p9), %v558_v2  ;;  %p166_p10 = scmp.lt.s32.totalorder (!%p142_p9), %s422_s26, 3  ;;  %v492_v3 = vld [vmem:[%s704_s1] ss:$16 sps:$4 sm:$0xff] (!%p142_p9)   ;;  %v493_v4 = vld [vmem:[%s704_s1 + $0x8] ss:$16 sps:$4 sm:$0xff] (!%p142_p9)  }
   0xf   : > { %226 = vmatprep.subr.bf16.mxu0 (!%p142_p9), %v488_v0  ;;  %269 = vmatprep.subr.bf16.mxu1 (!%p142_p9), %v490_v1  ;;  %vm222_vm0 = vcmask (!%p142_p9), 130048   ;;  %v183_v9 = vshrl.u32 (!%p142_p9), %v182_v8, 7  ;;  %s162_s10 = sand.u32 (!%p142_p9), 1, %s548_s13   ;;  %v180_v12 = vld [vmem:[%s705_s2] sm:$0xf] (!%p142_p9)  ;;  %s445_s25 = sshll.u32 (!%p142_p9), %s603_s16, 9 }
  0x10   : > { %227 = vmatpush1.bf16.msra.mxu0 (!%p142_p9), %v492_v3  ;;  %270 = vmatpush1.bf16.msra.mxu1 (!%p142_p9), %v493_v4  ;;  %s421_s19 = sshll.u32 (!%p142_p9), %s162_s10, 5  ;;  %s658_s28 = scalar_lea.hbm (!%p142_p9), %s706_s3, %s445_s25 }
  0x11   : > { %v184_v10 = vsub.s32 (!%p142_p9), 0, %v183_v9  ;;  %v192_v11 = vsub.s32 (!%p142_p9), 2, %v183_v9  ;;  %v188_v13 = vsub.s32 (!%p142_p9), 1, %v183_v9  ;;  %v196_v14 = vsub.s32 (!%p142_p9), 3, %v183_v9  ;;  %s164_s20 = scalar_lea.vmem (!%p142_p9), [#allocation2], %s421_s19  ;;  %s662_s16 = scalar_lea.sflag (!%p142_p9), [#allocation3], %s162_s10 }
  0x12   : > { %s355_s24 = sshll.u32 (!%p142_p9), %s164_s20, 4  ;;  %s559_s30 = smov (!%p142_p9), [#allocation2]   ;;  %s653_s24 = int_to_ptr.vmem [resolvable:$true] %s355_s24 }
  0x13   : > { %v185_v15 = vrot.slane (!%p142_p9), %v180_v12, %v184_v10  ;;  %v193_v16 = vrot.slane (!%p142_p9), %v180_v12, %v192_v11  ;;  %v189_v17 = vrot.slane (!%p142_p9), %v180_v12, %v188_v13  ;;  %v197_v18 = vrot.slane (!%p142_p9), %v180_v12, %v196_v14  ;;  %s494_s29 = scalar_lea.vmem (!%p142_p9), %s653_s24, 512  ;;  %s498_s4 = sshll.u32 (!%p142_p9), %s559_s30, 4  ;;  %s499_s4 = int_to_ptr.vmem [resolvable:$false] %s498_s4 }
  0x14   : > { %p495_p11 = scmp.ne.s32.totalorder (!%p142_p9), %s653_s24, %s494_s29  ;;  %s500_s5 = scalar_lea.vmem (!%p142_p9), %s499_s4, 1024 }
  0x15   : > { %s714_s26 = smov (!%p166_p10, %s422_s26), 3  ;;  %p501_p0 = scmp.lt.s32.totalorder %s653_s24, %s499_s4 }
  0x16   : > { %s423_s6 = sshll.u32 %s714_s26, 3  ;;  %p496_p12 = pnand %p495_p11, %p620_p5 }
  0x17   : > { %s169_s9 = scalar_lea.vmem %s703_s0, %s423_s6  ;;  %p502_p1 = scmp.lt.s32.totalorder %s500_s5, %s494_s29 }
  0x18   : > { %v173_v5 = vld [vmem:[%s169_s9] sm:$0xff]  ;;  %v174_v6 = vld [vmem:[%s169_s9 + $0x8] sm:$0xff]  ;;  %p497_p13 = pneg %p496_p12 }
  0x19   : > { %v175_v7 = vpack.c.bf16 %v174_v6, %v173_v5  ;;  %p503_p2 = por %p502_p1, %p501_p0 }
  0x1b   : > { %428 = vmatmul.mubr.msk.bf16.vlgmr.msra.gmra.mrb[0].mxu0 %vm222_vm0, %v175_v7  ;;  %429 = vmatmul.mubr.msk.bf16.vlgmr.msra.gmra.mrb[0].mxu1 %vm222_vm0, %v175_v7  ;;  %p504_p3 = pnand %p503_p2, %p497_p13 }
  0xee   : > { %v260_v19 = vpop.f32.mrb[0].mxu0  ;;  %v303_v20 = vpop.f32.mrb[0].mxu1 }
  0xef   : > { %v261_v21 = vadd.f32 %v260_v19, %v185_v15  ;;  %v304_v22 = vadd.f32 %v303_v20, %v193_v16  ;;  %v262_v23 = vpop.f32.mrb[1].mxu0  ;;  %v305_v24 = vpop.f32.mrb[1].mxu1 }
  0xf0   : > { %v263_v25 = vadd.f32 %v262_v23, %v189_v17  ;;  %v306_v26 = vadd.f32 %v305_v24, %v197_v18  ;;  %v264_v27 = vpop.f32.mrb[2].mxu0  ;;  %v307_v28 = vpop.f32.mrb[2].mxu1 }
  0xf1   : > { %v265_v29 = vadd.f32 %v264_v27, %v185_v15  ;;  %v308_v30 = vadd.f32 %v307_v28, %v193_v16  ;;  %v266_v31 = vpop.f32.mrb[3].mxu0  ;;  %v309_v32 = vpop.f32.mrb[3].mxu1 }
  0xf2   : > { %v440_v33 = vpack.c.bf16 %v263_v25, %v261_v21  ;;  %v441_v34 = vpack.c.bf16 %v306_v26, %v304_v22  ;;  %v267_v35 = vadd.f32 %v266_v31, %v189_v17  ;;  %v310_v36 = vadd.f32 %v309_v32, %v197_v18 }
  0xf4   : > { %336 = vst [vmem:[%s164_s20] sm:$0xff] %v440_v33  ;;  %337 = vst [vmem:[%s164_s20 + $0x8] sm:$0xff] %v441_v34  ;;  %v442_v37 = vpack.c.bf16 %v267_v35, %v265_v29  ;;  %v443_v38 = vpack.c.bf16 %v310_v36, %v308_v30 }
  0xf6   : > { %338 = vst [vmem:[%s164_s20 + $0x10] sm:$0xff] %v442_v37  ;;  %339 = vst [vmem:[%s164_s20 + $0x18] sm:$0xff] %v443_v38 }
  0xf7   : > { %507 = shalt.err (!%p504_p3)
}
  0xf8   : > { %s508_s6 = scalar_lea.hbm %s658_s28, 512  ;;  %s512_s9 = scalar_lea.hbm %s706_s3, 1024 }
  0xf9   : > { %p509_p4 = scmp.ne.s32.totalorder %s658_s28, %s508_s6  ;;  %p513_p9 = scmp.lt.u32.totalorder %s658_s28, %s706_s3 }
  0xfa   : > { %p514_p10 = scmp.lt.u32.totalorder %s512_s9, %s508_s6  ;;  %p516_p12 = scmp.lt.u32.totalorder %s508_s6, %s658_s28 }
  0xfb   : > { %p510_p7 = pnand %p509_p4, %p620_p5 }
  0xfc   : > { %p515_p11 = por %p514_p10, %p513_p9 }
  0xfd   : > { %p511_p8 = pneg %p510_p7 }
  0xfe   : > { %p517_p13 = por %p516_p12, %p515_p11 }
 0x100   : > { %p518_p0 = pnand %p517_p13, %p511_p8 }
 0x102   : > { %521 = shalt.err (!%p518_p0)
}
 0x103   : > { %s560_s17 = smov 256   ;;  %s561_s19 = smov 16  }
 0x104   : > { %446 = dma.vmem_to_hbm [thread:$0]  (%p620_p5), %s653_s24, 512, %s658_s28, %s662_s16, %s560_s17, %s560_s17, %s561_s19  }
 0x105 PF: > { %p452_p1 = scmp.ge.s32.totalorder %s556_s15, 2  ;;  %s370_s20 = sand.u32 1, %s544_s12  }
 0x106   : > { %s371_s25 = scalar_lea.sflag [#allocation3], %s370_s20 }
 0x107   : > { %p449_p2 = pnand %p452_p1, %p624_p6 }
 0x109   : > { %539 = dma.done.wait (!%p449_p2), %s371_s25, 512  }
 0x10a   : > { %541 = vsyncadd (!%p449_p2), %s371_s25, 4294966784  ;;  %p13_p3 = scmp.ge.s32.totalorder %s607_s18, 4   ;;  %s709_s12 = smov %s548_s13 }
 0x10b   : > { %s710_s13 = smov %s552_s14  ;;  %s711_s14 = smov %s618_s21 }
 0x10c   : > { %s712_s15 = smov %s607_s18  ;;  %15 = sbr.rel (!%p13_p3) target bundleno = 3 (0x3), region = 67 }
 0x113   :  { %376 = vsyncpa [#allocation3], 1 }
 0x114   :  { %378 = vsyncpa [#allocation3 + $0x1], 1 }

</bundles_post_ra>
